<compile_context>
chip_gen: v7x
topology: tpu7x:2x2x1
jax: 0.10.0
libtpu: 0.0.40
codegen_flags: <defaults>
</compile_context>

<pallas_src>
import jax
import jax.numpy as jnp
from jax import lax
from jax.experimental import pallas as pl
from jax.experimental.pallas import tpu as pltpu


def _conv_bn_relu_kernel(p_ref, w_ref, o_ref):
    # p_ref: (KKC+1, N*HW) bf16 — transposed im2col patches (+ ones row)
    # w_ref: (Cout, KKC+1) bf16 — BN-scale-folded weights (+ bias column)
    # o_ref: (Cout, N*HW)  f32  — lane-dense output slab (N*HW multiple of 128)
    acc = jnp.dot(w_ref[...], p_ref[...], preferred_element_type=jnp.float32)
    o_ref[...] = jnp.maximum(acc, 0.0).astype(o_ref.dtype)


@jax.jit
def conv2d_bn_relu(x_nchw, w_oihw, gamma, beta, running_mean, running_var,
                   eps=1e-5):
    """Conv2d(3x3, stride 1, pad 1, no bias) + BatchNorm2d(inference) + ReLU.

    x_nchw: (N, Cin, H, W), w_oihw: (Cout, Cin, KH, KW). Returns (N, Cout, H, W).
    """
    N, Cin, H, W = x_nchw.shape
    Cout, _, KH, KW = w_oihw.shape
    HW = H * W
    L = N * HW                       # lane axis: n*HW + h*W + w
    KKC = KH * KW * Cin

    # Fold BN (inference mode) into per-output-channel scale/bias.
    scale = gamma / jnp.sqrt(running_var + eps)
    bias = beta - running_mean * scale

    # Weights: fold scale, flatten in (kh, kw, ci) order, append bias column
    # so the bias rides the matmul against the ones row of the patches.
    w2 = (jnp.transpose(w_oihw, (0, 2, 3, 1)).reshape(Cout, KKC)
          * scale[:, None])                                      # (Cout, KKC)
    w_aug = jnp.concatenate([w2, bias[:, None]], axis=1)         # (Cout, KKC+1)

    # Transposed im2col with ALL images along the lane axis:
    #   patches[(kh*KW+kw)*Cin+ci, n*HW + h*W + w] = x_pad[n, ci, h+kh, w+kw]
    xp = jnp.pad(x_nchw, ((0, 0), (0, 0), (1, 1), (1, 1)))
    chunks = [
        jnp.transpose(xp[:, :, kh:kh + H, kw:kw + W], (1, 0, 2, 3)).reshape(Cin, L)
        for kh in range(KH) for kw in range(KW)
    ]
    chunks.append(jnp.ones((1, L), x_nchw.dtype))                # bias row
    patches = jnp.concatenate(chunks, axis=0)                    # (KKC+1, L)

    # bf16 operands (MXU-native); accumulation stays f32 in-kernel.
    patches = patches.astype(jnp.bfloat16)
    w_aug = w_aug.astype(jnp.bfloat16)

    out = pl.pallas_call(
        _conv_bn_relu_kernel,
        out_shape=jax.ShapeDtypeStruct((Cout, L), jnp.float32),
        grid=(1,),
        in_specs=[
            pl.BlockSpec((KKC + 1, L), lambda i: (0, 0)),
            pl.BlockSpec((Cout, KKC + 1), lambda i: (0, 0)),
        ],
        out_specs=pl.BlockSpec((Cout, L), lambda i: (0, 0)),
        compiler_params=pltpu.CompilerParams(
            dimension_semantics=("arbitrary",)),
    )(patches, w_aug)

    # Lane index is n*HW + h*W + w -> reshape straight back to NCHW.
    return jnp.transpose(out.reshape(Cout, N, H, W),
                         (1, 0, 2, 3)).astype(x_nchw.dtype)


if __name__ == "__main__":
    # Module config: Conv2dReLU(kernels_in=4, kernels_out=8, kernel_size=3)
    N, Cin, H, W = 2, 4, 16, 16
    Cout, K = 8, 3
    eps = 1e-5

    key = jax.random.PRNGKey(0)
    kx, kw, kg, kb, km, kv = jax.random.split(key, 6)

    # Deterministic synthetic parameters (shapes from nn.Conv2d / nn.BatchNorm2d).
    fan_in = Cin * K * K
    bound = (1.0 / fan_in) ** 0.5
    w_oihw = jax.random.uniform(kw, (Cout, Cin, K, K), jnp.float32,
                                minval=-bound, maxval=bound)
    gamma = 1.0 + 0.1 * jax.random.normal(kg, (Cout,), jnp.float32)
    beta = 0.1 * jax.random.normal(kb, (Cout,), jnp.float32)
    running_mean = 0.05 * jax.random.normal(km, (Cout,), jnp.float32)
    running_var = 1.0 + 0.1 * jax.random.uniform(kv, (Cout,), jnp.float32)

    # PyTorch-convention NCHW input.
    x_nchw = jax.random.normal(kx, (N, Cin, H, W), jnp.float32)

    out = conv2d_bn_relu(x_nchw, w_oihw, gamma, beta, running_mean, running_var)
    out = jax.block_until_ready(out)
    assert out.shape == (N, Cout, H, W)

    scale = gamma / jnp.sqrt(running_var + eps)
    bias = beta - running_mean * scale

    # Reference 1 (tight): identical bf16-rounded operands, f32 accumulation —
    # verifies the kernel's conv / BN-fold / ReLU math exactly.
    w_scaled_bf16 = (w_oihw * scale[:, None, None, None]).astype(jnp.bfloat16)
    x_bf16 = x_nchw.astype(jnp.bfloat16)
    bias_bf16 = bias.astype(jnp.bfloat16).astype(jnp.float32)
    ref_conv_bf16 = lax.conv_general_dilated(
        x_bf16, w_scaled_bf16, window_strides=(1, 1), padding=((1, 1), (1, 1)),
        dimension_numbers=("NCHW", "OIHW", "NCHW"),
        preferred_element_type=jnp.float32)
    ref_tight = jnp.maximum(ref_conv_bf16 + bias_bf16[None, :, None, None], 0.0)
    assert jnp.allclose(out, ref_tight, atol=1e-4, rtol=1e-4), \
        "mismatch vs bf16-operand reference"

    # Reference 2 (loose): full-f32 PyTorch-style forward; only bf16 operand
    # rounding separates the kernel from this, so ~1e-2-level agreement.
    ref_conv = lax.conv_general_dilated(
        x_nchw, w_oihw, window_strides=(1, 1), padding=((1, 1), (1, 1)),
        dimension_numbers=("NCHW", "OIHW", "NCHW"))
    ref_f32 = jnp.maximum(ref_conv * scale[None, :, None, None]
                          + bias[None, :, None, None], 0.0)
    assert jnp.allclose(out, ref_f32, atol=5e-2, rtol=5e-2), \
        "mismatch vs f32 reference"

    print("KERNEL_OK")
</pallas_src>

<mosaic_0001>
module attributes {stable_mosaic.version = 11 : i64} {
  func.func @_conv_bn_relu_kernel(%arg0: i32, %arg1: memref<37x512xbf16, #tpu.memory_space<vmem>>, %arg2: memref<8x37xbf16, #tpu.memory_space<vmem>>, %arg3: memref<8x512xf32, #tpu.memory_space<vmem>>) attributes {dimension_semantics = [#tpu.dimension_semantics<arbitrary>], iteration_bounds = array<i64: 1>, scalar_prefetch = 0 : i64, scratch_operands = 0 : i64, tpu.core_type = #tpu.core_type<tc>, window_params = [{pipeline_mode = #tpu.pipeline_mode<synchronous>, transform_indices = @transform_0, window_bounds = array<i64: 37, 512>}, {pipeline_mode = #tpu.pipeline_mode<synchronous>, transform_indices = @transform_1, window_bounds = array<i64: 8, 37>}, {pipeline_mode = #tpu.pipeline_mode<synchronous>, transform_indices = @transform_2, window_bounds = array<i64: 8, 512>}]} {
    %c0 = arith.constant 0 : index
    %c0_0 = arith.constant 0 : index
    %0 = vector.load %arg2[%c0, %c0_0] : memref<8x37xbf16, #tpu.memory_space<vmem>>, vector<8x37xbf16>
    %c0_1 = arith.constant 0 : index
    %c0_2 = arith.constant 0 : index
    %1 = vector.load %arg1[%c0_1, %c0_2] : memref<37x512xbf16, #tpu.memory_space<vmem>>, vector<37x512xbf16>
    %cst = arith.constant dense<0.000000e+00> : vector<8x512xf32>
    %2 = tpu.matmul %0, %1, %cst {dimension_numbers = #tpu.dot_dimension_numbers<[1], [0], [0], [1], [0, 0, 1, 1], [], []>} : vector<8x37xbf16>, vector<37x512xbf16>, vector<8x512xf32> -> vector<8x512xf32>
    %cst_3 = arith.constant 0.000000e+00 : f32
    %3 = vector.broadcast %cst_3 : f32 to vector<8x512xf32>
    %4 = arith.maximumf %2, %3 : vector<8x512xf32>
    %c0_4 = arith.constant 0 : index
    %c0_5 = arith.constant 0 : index
    %5 = vector.load %arg3[%c0_4, %c0_5] : memref<8x512xf32, #tpu.memory_space<vmem>>, vector<8x512xf32>
    tpu.vector_store %arg3[%c0_4, %c0_5], %4 {strides = array<i32>} : memref<8x512xf32, #tpu.memory_space<vmem>>, vector<8x512xf32>,
    return
  }
  func.func @transform_0(%arg0: i32) -> (i32, i32) {
    %c0_i32 = arith.constant 0 : i32
    %c0_i32_0 = arith.constant 0 : i32
    %c0_i32_1 = arith.constant 0 : i32
    return %c0_i32, %c0_i32_0 : i32, i32
  }
  func.func @transform_1(%arg0: i32) -> (i32, i32) {
    %c0_i32 = arith.constant 0 : i32
    %c0_i32_0 = arith.constant 0 : i32
    %c0_i32_1 = arith.constant 0 : i32
    return %c0_i32, %c0_i32_0 : i32, i32
  }
  func.func @transform_2(%arg0: i32) -> (i32, i32) {
    %c0_i32 = arith.constant 0 : i32
    %c0_i32_0 = arith.constant 0 : i32
    %c0_i32_1 = arith.constant 0 : i32
    return %c0_i32, %c0_i32_0 : i32, i32
  }
}

</mosaic_0001>

<bundles_post_ra>
// kernel: conv2d_bn_relu.1
= control target key start
LH: loop header
LB: loop body
LE: loop exit
PB: predicated region body
PF: predicated region fallthrough
CT: control target
= control target key end

     0   :  { %vm77_vm0 = vcmask 1041408   ;;  %v219_v1 = vmov 0   ;;  %vm78_vm1 = vcmask 1042432   ;;  %v220_v3 = vmov 65535   ;;  %s281_s0 = inlined_call_operand.vmem [shape: bf16[37,512], index: 0, kind: input, shape index: {}]   ;;  %s282_s1 = inlined_call_operand.vmem [shape: bf16[8,37], index: 1, kind: input, shape index: {}]   ;;  %s283_s2 = inlined_call_operand.vmem [shape: f32[8,512], index: 2, kind: output, shape index: {}]  }
   0x1   :  { %v203_v0 = vld [vmem:[%s281_s0 + $0x4] ss:$16 sps:$4 sm:$0xff]   ;;  %125 = vmatprep.mubr.bf16.mxu0 %v219_v1  ;;  %166 = vmatprep.mubr.bf16.mxu1 %v219_v1  ;;  %v205_v2 = vld [vmem:[%s281_s0 + $0xc] ss:$16 sps:$4 sm:$0xff]   ;;  %v79_v4 = vsel %vm77_vm0, 4294967295, %v220_v3  ;;  %vm73_vm2 = vcmask 302080  }
   0x2   :  { %93 = vmatprep.subr.bf16.mxu0 %v203_v0  ;;  %v207_v5 = vld [vmem:[%s281_s0] ss:$16 sps:$4 sm:$0xff]   ;;  %v208_v6 = vld [vmem:[%s281_s0 + $0x8] ss:$16 sps:$4 sm:$0xff]   ;;  %134 = vmatprep.subr.bf16.mxu1 %v205_v2  ;;  %v209_v7 = vld [vmem:[%s281_s0 + $0x24] ss:$16 sps:$4 sm:$0xff]  }
   0x3   :  { %94 = vmatpush1.bf16.msra.mxu0 %v207_v5  ;;  %135 = vmatpush1.bf16.msra.mxu1 %v208_v6  ;;  %v211_v8 = vld [vmem:[%s281_s0 + $0x2c] ss:$16 sps:$4 sm:$0xff]   ;;  %v213_v9 = vld [vmem:[%s281_s0 + $0x20] ss:$16 sps:$4 sm:$0xff]   ;;  %v80_v10 = vsel %vm78_vm1, %v79_v4, 0 }
   0x4   :  { %95 = vmatprep.subr.bf16.mxu0 %v209_v7  ;;  %v214_v11 = vld [vmem:[%s281_s0 + $0x28] ss:$16 sps:$4 sm:$0xff]   ;;  %v21_v12 = vld [vmem:[%s281_s0 + $0x40] sm:$0x77]  ;;  %136 = vmatprep.subr.bf16.mxu1 %v211_v8 }
   0x5   :  { %v22_v13 = vld [vmem:[%s281_s0 + $0x48] sm:$0x77]  ;;  %v196_v14 = vcombine.high %v21_v12, %v21_v12  ;;  %v195_v16 = vcombine.low %v21_v12, %v21_v12  ;;  %v12_v22 = vld [vmem:[%s282_s1] sm:$0xf] }
   0x6   :  { %v198_v15 = vcombine.high %v22_v13, %v22_v13  ;;  %v197_v17 = vcombine.low %v22_v13, %v22_v13 }
   0x7   :  { %96 = vmatpush1.bf16.msra.mxu0 %v213_v9  ;;  %137 = vmatpush1.bf16.msra.mxu1 %v214_v11  ;;  %v85_v18 = vand.u32 %v196_v14, %v80_v10  ;;  %v82_v20 = vand.u32 %v195_v16, %v80_v10 }
   0x8   :  { %v91_v19 = vand.u32 %v198_v15, %v80_v10  ;;  %v88_v21 = vand.u32 %v197_v17, %v80_v10 }
   0x9   :  { %97 = vmatprep.subr.bf16.mxu0 %v85_v18 }
   0xa   :  { %138 = vmatprep.subr.bf16.mxu1 %v91_v19 }
   0xb   :  { %98 = vmatpush1.bf16.msra.mxu0 %v82_v20  ;;  %139 = vmatpush1.bf16.msra.mxu1 %v88_v21 }
   0xe   :  { %199 = vmatmul.mubr.msk.bf16.vlgmr.msra.gmra.mrb[0].mxu0 %vm73_vm2, %v12_v22  ;;  %200 = vmatmul.mubr.msk.bf16.vlgmr.msra.gmra.mrb[0].mxu1 %vm73_vm2, %v12_v22 }
  0xe1   :  { %v127_v23 = vpop.f32.mrb[0].mxu0  ;;  %v168_v24 = vpop.f32.mrb[0].mxu1 }
  0xe2   :  { %v175_v25 = vmax.f32 %v127_v23, 0.0  ;;  %v177_v26 = vmax.f32 %v168_v24, 0.0  ;;  %v129_v27 = vpop.f32.mrb[1].mxu0  ;;  %v170_v28 = vpop.f32.mrb[1].mxu1 }
  0xe3   :  { %v176_v29 = vmax.f32 %v129_v27, 0.0  ;;  %v178_v30 = vmax.f32 %v170_v28, 0.0  ;;  %v131_v31 = vpop.f32.mrb[2].mxu0  ;;  %v172_v32 = vpop.f32.mrb[2].mxu1 }
  0xe4   :  { %179 = vst [vmem:[%s283_s2] sm:$0xff] %v175_v25  ;;  %181 = vst [vmem:[%s283_s2 + $0x10] sm:$0xff] %v177_v26  ;;  %v132_v33 = vpop.f32.mrb[3].mxu0  ;;  %v173_v34 = vpop.f32.mrb[3].mxu1 }
  0xe5   :  { %180 = vst [vmem:[%s283_s2 + $0x8] sm:$0xff] %v176_v29  ;;  %182 = vst [vmem:[%s283_s2 + $0x18] sm:$0xff] %v178_v30 }

</bundles_post_ra>
